<compile_context>
chip_gen: v7x
topology: tpu7x:2x2x1
jax: 0.10.0
libtpu: 0.0.40
codegen_flags: <defaults>
</compile_context>

<pallas_src>
import functools
import math

import jax
import jax.numpy as jnp
from jax.experimental import pallas as pl
from jax.experimental.pallas import tpu as pltpu

LANE = 128
SUBLANE = 8
NEG_INF = -1e30


def _round_up(n, m):
    return ((n + m - 1) // m) * m


def gru_kernel(x_ref, h0_ref, w_ih_ref, w_hh_ref, b_ihh_ref, b_hn_ref,
               fc_w_ref, fc_b_ref, out_ref, hid_ref, hseq_ref):
    S = x_ref.shape[0]
    Hp = h0_ref.shape[1]           # lane-padded hidden width (multiple of 128)
    Hr = w_hh_ref.shape[0]         # real hidden size rounded up to 8 sublanes

    # Input projections for all timesteps at once (single MXU matmul, off the
    # serial chain).  b_ihh = b_ih + [b_hr, b_hz, 0]; padded lanes of every
    # gate block are exactly 0 (keeps the h padded-lane invariant below).
    gi = (jnp.dot(x_ref[...], w_ih_ref[...], preferred_element_type=jnp.float32)
          + b_ihh_ref[...])                              # (S, 3*Hp)
    gi_r = gi[:, 0:Hp]
    gi_z = gi[:, Hp:2 * Hp]
    gi_n = gi[:, 2 * Hp:3 * Hp]

    # Hoist loop-invariant VMEM loads out of the unrolled recurrence.
    w_hh = w_hh_ref[...]                                 # (Hr, 3*Hp)
    b_hn = b_hn_ref[...]                                 # (1, Hp)

    h = h0_ref[...]                # (1, Hp); padded lanes are exactly 0 and stay 0
    # Sequential recurrence.  S is small & static, so an unrolled Python loop
    # keeps the whole chain visible to the LLO scheduler.
    for t in range(S):
        gh = jnp.dot(h[:, :Hr], w_hh,
                     preferred_element_type=jnp.float32)  # (1, 3*Hp)
        # Gate blocks at lane offsets 0 / Hp / 2*Hp -> vreg-aligned slices.
        r = jax.nn.sigmoid(gi_r[t:t + 1, :] + gh[:, 0:Hp])
        z = jax.nn.sigmoid(gi_z[t:t + 1, :] + gh[:, Hp:2 * Hp])
        n = jnp.tanh(gi_n[t:t + 1, :] + r * (gh[:, 2 * Hp:3 * Hp] + b_hn))
        h = n + z * (h - n)        # == (1 - z) * n + z * h
        hseq_ref[pl.ds(t, 1), :] = h

    hid_ref[...] = h

    # Fully-connected head on all timesteps at once: (S, Op).
    hs = hseq_ref[...]                                   # (S, Hp)
    logits = (jnp.dot(hs[:, :Hr], fc_w_ref[...],
                      preferred_element_type=jnp.float32) + fc_b_ref[...])

    # LogSoftmax over classes.  Padded class columns carry a -1e30 bias so they
    # contribute nothing to the logsumexp; wrapper slices them away.
    m = jnp.max(logits, axis=-1, keepdims=True)
    shifted = logits - m
    lse = jnp.log(jnp.sum(jnp.exp(shifted), axis=-1, keepdims=True))
    out_ref[...] = (shifted - lse).astype(out_ref.dtype)


@functools.partial(jax.jit, static_argnames=("hidden_size", "output_size"))
def gru_forward(x, h0, kparams, *, hidden_size, output_size):
    """x: (seq, 1, input_size), h0: (1, 1, hidden_size). Returns (out, hid)."""
    S = x.shape[0]
    I = x.shape[-1]
    Ir = kparams["w_ih_T"].shape[0]          # real input rows (8-aligned)
    Hp = kparams["b_hn"].shape[1]            # lane-padded hidden width
    Op = kparams["fc_b"].shape[1]            # lane-padded output width

    # Squeeze batch=1; pad only up to the 8-aligned real contraction size.
    x2d = jnp.zeros((S, Ir), jnp.float32).at[:, :I].set(x.reshape(S, I))
    h2d = jnp.zeros((1, Hp), jnp.float32).at[:, :hidden_size].set(
        h0.reshape(1, hidden_size))

    vmem = pl.BlockSpec(memory_space=pltpu.MemorySpace.VMEM)
    out_p, hid_p = pl.pallas_call(
        gru_kernel,
        out_shape=(
            jax.ShapeDtypeStruct((S, Op), jnp.float32),   # lane-dense logits slab
            jax.ShapeDtypeStruct((1, Hp), jnp.float32),   # lane-dense final hidden
        ),
        in_specs=[vmem] * 8,
        out_specs=(vmem, vmem),
        scratch_shapes=[
            pltpu.VMEM((S, Hp), jnp.float32),   # per-timestep hidden states
        ],
    )(x2d, h2d,
      kparams["w_ih_T"], kparams["w_hh_T"], kparams["b_ihh"], kparams["b_hn"],
      kparams["fc_w_T"], kparams["fc_b"])

    out = out_p[:, :output_size]
    hid = hid_p[:, :hidden_size].reshape(1, 1, hidden_size)
    return out, hid


def init_params(key, input_size, hidden_size, output_size):
    """Raw PyTorch-layout parameters (uniform +-1/sqrt(hidden), gate order [r|z|n])."""
    ks = jax.random.split(key, 6)
    bound = 1.0 / math.sqrt(hidden_size)
    u = lambda k, shape: jax.random.uniform(k, shape, jnp.float32, -bound, bound)
    return {
        "w_ih": u(ks[0], (3 * hidden_size, input_size)),   # weight_ih_l0
        "w_hh": u(ks[1], (3 * hidden_size, hidden_size)),  # weight_hh_l0
        "b_ih": u(ks[2], (3 * hidden_size,)),
        "b_hh": u(ks[3], (3 * hidden_size,)),
        "fc_w": u(ks[4], (output_size, hidden_size)),
        "fc_b": u(ks[5], (output_size,)),
    }


def pad_params(raw, input_size, hidden_size, output_size):
    """Transposed, gate-aligned kernel params.

    Row (contraction) dims are padded only to 8 sublanes (real size), while the
    gate/output column blocks stay 128-lane aligned.
    """
    H, I, O = hidden_size, input_size, output_size
    Hr = _round_up(H, SUBLANE)               # contraction rows for w_hh / fc_w
    Ir = _round_up(I, SUBLANE)               # contraction rows for w_ih
    Hp = _round_up(max(H, LANE), LANE)       # 128-lane gate block width
    Op = _round_up(max(O, LANE), LANE)       # 128-lane output block width

    w_ih_T = jnp.zeros((Ir, 3 * Hp), jnp.float32)
    w_hh_T = jnp.zeros((Hr, 3 * Hp), jnp.float32)
    b_ihh = jnp.zeros((1, 3 * Hp), jnp.float32)
    b_hn = jnp.zeros((1, Hp), jnp.float32)
    for g in range(3):  # gate order [r | z | n], each block at lane offset g*Hp
        w_ih_T = w_ih_T.at[:I, g * Hp:g * Hp + H].set(raw["w_ih"][g * H:(g + 1) * H, :].T)
        w_hh_T = w_hh_T.at[:H, g * Hp:g * Hp + H].set(raw["w_hh"][g * H:(g + 1) * H, :].T)
        bg = raw["b_ih"][g * H:(g + 1) * H]
        if g < 2:  # fold b_hh for r/z gates into the precomputed input projection
            bg = bg + raw["b_hh"][g * H:(g + 1) * H]
        b_ihh = b_ihh.at[0, g * Hp:g * Hp + H].set(bg)
    b_hn = b_hn.at[0, :H].set(raw["b_hh"][2 * H:3 * H])

    fc_w_T = jnp.zeros((Hr, Op), jnp.float32).at[:H, :O].set(raw["fc_w"].T)
    fc_b = jnp.full((1, Op), NEG_INF, jnp.float32).at[0, :O].set(raw["fc_b"])

    return {"w_ih_T": w_ih_T, "w_hh_T": w_hh_T, "b_ihh": b_ihh, "b_hn": b_hn,
            "fc_w_T": fc_w_T, "fc_b": fc_b}


def gru_reference(x, h0, raw, hidden_size):
    """Pure-JAX reference matching PyTorch nn.GRU + Linear + LogSoftmax."""
    H = hidden_size
    hp = jax.lax.Precision.HIGHEST
    h = h0.reshape(1, H)
    outs = []
    for t in range(x.shape[0]):
        xt = x[t]  # (1, I)
        gi = jnp.dot(xt, raw["w_ih"].T, precision=hp) + raw["b_ih"]
        gh = jnp.dot(h, raw["w_hh"].T, precision=hp) + raw["b_hh"]
        r = jax.nn.sigmoid(gi[:, :H] + gh[:, :H])
        z = jax.nn.sigmoid(gi[:, H:2 * H] + gh[:, H:2 * H])
        n = jnp.tanh(gi[:, 2 * H:3 * H] + r * gh[:, 2 * H:3 * H])
        h = (1.0 - z) * n + z * h
        outs.append(h)
    gru_out = jnp.concatenate(outs, axis=0)
    logits = jnp.dot(gru_out, raw["fc_w"].T, precision=hp) + raw["fc_b"]
    return jax.nn.log_softmax(logits, axis=-1), h.reshape(1, 1, H)


if __name__ == "__main__":
    input_size, hidden_size, output_size = 16, 32, 10
    seq_len = 8

    key = jax.random.PRNGKey(0)
    kx, kp = jax.random.split(key)

    x = jax.random.normal(kx, (seq_len, 1, input_size), jnp.float32)  # (seq, batch=1, feat)
    h0 = jnp.zeros((1, 1, hidden_size), jnp.float32)                  # initHidden()

    raw = init_params(kp, input_size, hidden_size, output_size)
    kparams = pad_params(raw, input_size, hidden_size, output_size)

    out, hid = gru_forward(x, h0, kparams,
                           hidden_size=hidden_size, output_size=output_size)
    jax.block_until_ready((out, hid))

    assert out.shape == (seq_len, output_size)
    assert hid.shape == (1, 1, hidden_size)
    # log_softmax rows should sum to ~1 in prob space
    assert jnp.allclose(jnp.sum(jnp.exp(out), axis=-1), 1.0, atol=1e-4)

    # Numerical check against pure-JAX reference of the PyTorch semantics.
    out_ref, hid_ref = gru_reference(x, h0, raw, hidden_size)
    assert jnp.allclose(out, out_ref, atol=1e-4, rtol=1e-4)
    assert jnp.allclose(hid, hid_ref, atol=1e-4, rtol=1e-4)

    print("KERNEL_OK")
</pallas_src>

<mosaic_0001>
module attributes {stable_mosaic.version = 11 : i64} {
  func.func @gru_kernel(%arg0: memref<8x16xf32, #tpu.memory_space<vmem>>, %arg1: memref<1x128xf32, #tpu.memory_space<vmem>>, %arg2: memref<16x384xf32, #tpu.memory_space<vmem>>, %arg3: memref<32x384xf32, #tpu.memory_space<vmem>>, %arg4: memref<1x384xf32, #tpu.memory_space<vmem>>, %arg5: memref<1x128xf32, #tpu.memory_space<vmem>>, %arg6: memref<32x128xf32, #tpu.memory_space<vmem>>, %arg7: memref<1x128xf32, #tpu.memory_space<vmem>>, %arg8: memref<8x128xf32, #tpu.memory_space<vmem>>, %arg9: memref<1x128xf32, #tpu.memory_space<vmem>>, %arg10: memref<8x128xf32, #tpu.memory_space<vmem>>) attributes {dimension_semantics = [], scalar_prefetch = 0 : i64, scratch_operands = 1 : i64, tpu.core_type = #tpu.core_type<tc>} {
    %c0 = arith.constant 0 : index
    %c0_0 = arith.constant 0 : index
    %0 = vector.load %arg0[%c0, %c0_0] : memref<8x16xf32, #tpu.memory_space<vmem>>, vector<8x16xf32>
    %c0_1 = arith.constant 0 : index
    %c0_2 = arith.constant 0 : index
    %1 = vector.load %arg2[%c0_1, %c0_2] : memref<16x384xf32, #tpu.memory_space<vmem>>, vector<16x384xf32>
    %cst = arith.constant dense<0.000000e+00> : vector<8x384xf32>
    %2 = tpu.matmul %0, %1, %cst {dimension_numbers = #tpu.dot_dimension_numbers<[1], [0], [0], [1], [0, 0, 1, 1], [], []>} : vector<8x16xf32>, vector<16x384xf32>, vector<8x384xf32> -> vector<8x384xf32>
    %c0_3 = arith.constant 0 : index
    %c0_4 = arith.constant 0 : index
    %3 = vector.load %arg4[%c0_3, %c0_4] : memref<1x384xf32, #tpu.memory_space<vmem>>, vector<1x384xf32>
    %4 = vector.broadcast %3 : vector<1x384xf32> to vector<8x384xf32>
    %5 = arith.addf %2, %4 : vector<8x384xf32>
    %6 = vector.extract_strided_slice %5 {offsets = [0, 0], sizes = [8, 128], strides = [1, 1]} : vector<8x384xf32> to vector<8x128xf32>
    %7 = vector.extract_strided_slice %5 {offsets = [0, 128], sizes = [8, 128], strides = [1, 1]} : vector<8x384xf32> to vector<8x128xf32>
    %8 = vector.extract_strided_slice %5 {offsets = [0, 256], sizes = [8, 128], strides = [1, 1]} : vector<8x384xf32> to vector<8x128xf32>
    %c0_5 = arith.constant 0 : index
    %c0_6 = arith.constant 0 : index
    %9 = vector.load %arg3[%c0_5, %c0_6] : memref<32x384xf32, #tpu.memory_space<vmem>>, vector<32x384xf32>
    %c0_7 = arith.constant 0 : index
    %c0_8 = arith.constant 0 : index
    %10 = vector.load %arg5[%c0_7, %c0_8] : memref<1x128xf32, #tpu.memory_space<vmem>>, vector<1x128xf32>
    %c0_9 = arith.constant 0 : index
    %c0_10 = arith.constant 0 : index
    %11 = vector.load %arg1[%c0_9, %c0_10] : memref<1x128xf32, #tpu.memory_space<vmem>>, vector<1x128xf32>
    %12 = vector.extract_strided_slice %11 {offsets = [0, 0], sizes = [1, 32], strides = [1, 1]} : vector<1x128xf32> to vector<1x32xf32>
    %cst_11 = arith.constant dense<0.000000e+00> : vector<1x384xf32>
    %13 = tpu.matmul %12, %9, %cst_11 {dimension_numbers = #tpu.dot_dimension_numbers<[1], [0], [0], [1], [0, 0, 1, 1], [], []>} : vector<1x32xf32>, vector<32x384xf32>, vector<1x384xf32> -> vector<1x384xf32>
    %14 = vector.extract_strided_slice %6 {offsets = [0, 0], sizes = [1, 128], strides = [1, 1]} : vector<8x128xf32> to vector<1x128xf32>
    %15 = vector.extract_strided_slice %13 {offsets = [0, 0], sizes = [1, 128], strides = [1, 1]} : vector<1x384xf32> to vector<1x128xf32>
    %16 = arith.addf %14, %15 : vector<1x128xf32>
    %17 = arith.negf %16 : vector<1x128xf32>
    %18 = math.exp %17 : vector<1x128xf32>
    %cst_12 = arith.constant 1.000000e+00 : f32
    %19 = vector.broadcast %cst_12 : f32 to vector<1x128xf32>
    %20 = arith.addf %19, %18 : vector<1x128xf32>
    %21 = arith.divf %19, %20 : vector<1x128xf32>
    %22 = vector.extract_strided_slice %7 {offsets = [0, 0], sizes = [1, 128], strides = [1, 1]} : vector<8x128xf32> to vector<1x128xf32>
    %23 = vector.extract_strided_slice %13 {offsets = [0, 128], sizes = [1, 128], strides = [1, 1]} : vector<1x384xf32> to vector<1x128xf32>
    %24 = arith.addf %22, %23 : vector<1x128xf32>
    %25 = arith.negf %24 : vector<1x128xf32>
    %26 = math.exp %25 : vector<1x128xf32>
    %cst_13 = arith.constant 1.000000e+00 : f32
    %27 = vector.broadcast %cst_13 : f32 to vector<1x128xf32>
    %28 = arith.addf %27, %26 : vector<1x128xf32>
    %29 = arith.divf %27, %28 : vector<1x128xf32>
    %30 = vector.extract_strided_slice %8 {offsets = [0, 0], sizes = [1, 128], strides = [1, 1]} : vector<8x128xf32> to vector<1x128xf32>
    %31 = vector.extract_strided_slice %13 {offsets = [0, 256], sizes = [1, 128], strides = [1, 1]} : vector<1x384xf32> to vector<1x128xf32>
    %32 = arith.addf %31, %10 : vector<1x128xf32>
    %33 = arith.mulf %21, %32 : vector<1x128xf32>
    %34 = arith.addf %30, %33 : vector<1x128xf32>
    %35 = math.tanh %34 : vector<1x128xf32>
    %36 = arith.subf %11, %35 : vector<1x128xf32>
    %37 = arith.mulf %29, %36 : vector<1x128xf32>
    %38 = arith.addf %35, %37 : vector<1x128xf32>
    %c0_14 = arith.constant 0 : index
    %c0_15 = arith.constant 0 : index
    %39 = vector.load %arg10[%c0_14, %c0_15] : memref<8x128xf32, #tpu.memory_space<vmem>>, vector<1x128xf32>
    tpu.vector_store %arg10[%c0_14, %c0_15], %38 {strides = array<i32>} : memref<8x128xf32, #tpu.memory_space<vmem>>, vector<1x128xf32>,
    %40 = vector.extract_strided_slice %38 {offsets = [0, 0], sizes = [1, 32], strides = [1, 1]} : vector<1x128xf32> to vector<1x32xf32>
    %cst_16 = arith.constant dense<0.000000e+00> : vector<1x384xf32>
    %41 = tpu.matmul %40, %9, %cst_16 {dimension_numbers = #tpu.dot_dimension_numbers<[1], [0], [0], [1], [0, 0, 1, 1], [], []>} : vector<1x32xf32>, vector<32x384xf32>, vector<1x384xf32> -> vector<1x384xf32>
    %42 = vector.extract_strided_slice %6 {offsets = [1, 0], sizes = [1, 128], strides = [1, 1]} : vector<8x128xf32> to vector<1x128xf32>
    %43 = vector.extract_strided_slice %41 {offsets = [0, 0], sizes = [1, 128], strides = [1, 1]} : vector<1x384xf32> to vector<1x128xf32>
    %44 = arith.addf %42, %43 : vector<1x128xf32>
    %45 = arith.negf %44 : vector<1x128xf32>
    %46 = math.exp %45 : vector<1x128xf32>
    %cst_17 = arith.constant 1.000000e+00 : f32
    %47 = vector.broadcast %cst_17 : f32 to vector<1x128xf32>
    %48 = arith.addf %47, %46 : vector<1x128xf32>
    %49 = arith.divf %47, %48 : vector<1x128xf32>
    %50 = vector.extract_strided_slice %7 {offsets = [1, 0], sizes = [1, 128], strides = [1, 1]} : vector<8x128xf32> to vector<1x128xf32>
    %51 = vector.extract_strided_slice %41 {offsets = [0, 128], sizes = [1, 128], strides = [1, 1]} : vector<1x384xf32> to vector<1x128xf32>
    %52 = arith.addf %50, %51 : vector<1x128xf32>
    %53 = arith.negf %52 : vector<1x128xf32>
    %54 = math.exp %53 : vector<1x128xf32>
    %cst_18 = arith.constant 1.000000e+00 : f32
    %55 = vector.broadcast %cst_18 : f32 to vector<1x128xf32>
    %56 = arith.addf %55, %54 : vector<1x128xf32>
    %57 = arith.divf %55, %56 : vector<1x128xf32>
    %58 = vector.extract_strided_slice %8 {offsets = [1, 0], sizes = [1, 128], strides = [1, 1]} : vector<8x128xf32> to vector<1x128xf32>
    %59 = vector.extract_strided_slice %41 {offsets = [0, 256], sizes = [1, 128], strides = [1, 1]} : vector<1x384xf32> to vector<1x128xf32>
    %60 = arith.addf %59, %10 : vector<1x128xf32>
    %61 = arith.mulf %49, %60 : vector<1x128xf32>
    %62 = arith.addf %58, %61 : vector<1x128xf32>
    %63 = math.tanh %62 : vector<1x128xf32>
    %64 = arith.subf %38, %63 : vector<1x128xf32>
    %65 = arith.mulf %57, %64 : vector<1x128xf32>
    %66 = arith.addf %63, %65 : vector<1x128xf32>
    %c1 = arith.constant 1 : index
    %c0_19 = arith.constant 0 : index
    %67 = vector.load %arg10[%c1, %c0_19] : memref<8x128xf32, #tpu.memory_space<vmem>>, vector<1x128xf32>
    tpu.vector_store %arg10[%c1, %c0_19], %66 {strides = array<i32>} : memref<8x128xf32, #tpu.memory_space<vmem>>, vector<1x128xf32>,
    %68 = vector.extract_strided_slice %66 {offsets = [0, 0], sizes = [1, 32], strides = [1, 1]} : vector<1x128xf32> to vector<1x32xf32>
    %cst_20 = arith.constant dense<0.000000e+00> : vector<1x384xf32>
    %69 = tpu.matmul %68, %9, %cst_20 {dimension_numbers = #tpu.dot_dimension_numbers<[1], [0], [0], [1], [0, 0, 1, 1], [], []>} : vector<1x32xf32>, vector<32x384xf32>, vector<1x384xf32> -> vector<1x384xf32>
    %70 = vector.extract_strided_slice %6 {offsets = [2, 0], sizes = [1, 128], strides = [1, 1]} : vector<8x128xf32> to vector<1x128xf32>
    %71 = vector.extract_strided_slice %69 {offsets = [0, 0], sizes = [1, 128], strides = [1, 1]} : vector<1x384xf32> to vector<1x128xf32>
    %72 = arith.addf %70, %71 : vector<1x128xf32>
    %73 = arith.negf %72 : vector<1x128xf32>
    %74 = math.exp %73 : vector<1x128xf32>
    %cst_21 = arith.constant 1.000000e+00 : f32
    %75 = vector.broadcast %cst_21 : f32 to vector<1x128xf32>
    %76 = arith.addf %75, %74 : vector<1x128xf32>
    %77 = arith.divf %75, %76 : vector<1x128xf32>
    %78 = vector.extract_strided_slice %7 {offsets = [2, 0], sizes = [1, 128], strides = [1, 1]} : vector<8x128xf32> to vector<1x128xf32>
    %79 = vector.extract_strided_slice %69 {offsets = [0, 128], sizes = [1, 128], strides = [1, 1]} : vector<1x384xf32> to vector<1x128xf32>
    %80 = arith.addf %78, %79 : vector<1x128xf32>
    %81 = arith.negf %80 : vector<1x128xf32>
    %82 = math.exp %81 : vector<1x128xf32>
    %cst_22 = arith.constant 1.000000e+00 : f32
    %83 = vector.broadcast %cst_22 : f32 to vector<1x128xf32>
    %84 = arith.addf %83, %82 : vector<1x128xf32>
    %85 = arith.divf %83, %84 : vector<1x128xf32>
    %86 = vector.extract_strided_slice %8 {offsets = [2, 0], sizes = [1, 128], strides = [1, 1]} : vector<8x128xf32> to vector<1x128xf32>
    %87 = vector.extract_strided_slice %69 {offsets = [0, 256], sizes = [1, 128], strides = [1, 1]} : vector<1x384xf32> to vector<1x128xf32>
    %88 = arith.addf %87, %10 : vector<1x128xf32>
    %89 = arith.mulf %77, %88 : vector<1x128xf32>
    %90 = arith.addf %86, %89 : vector<1x128xf32>
    %91 = math.tanh %90 : vector<1x128xf32>
    %92 = arith.subf %66, %91 : vector<1x128xf32>
    %93 = arith.mulf %85, %92 : vector<1x128xf32>
    %94 = arith.addf %91, %93 : vector<1x128xf32>
    %c2 = arith.constant 2 : index
    %c0_23 = arith.constant 0 : index
    %95 = vector.load %arg10[%c2, %c0_23] : memref<8x128xf32, #tpu.memory_space<vmem>>, vector<1x128xf32>
    tpu.vector_store %arg10[%c2, %c0_23], %94 {strides = array<i32>} : memref<8x128xf32, #tpu.memory_space<vmem>>, vector<1x128xf32>,
    %96 = vector.extract_strided_slice %94 {offsets = [0, 0], sizes = [1, 32], strides = [1, 1]} : vector<1x128xf32> to vector<1x32xf32>
    %cst_24 = arith.constant dense<0.000000e+00> : vector<1x384xf32>
    %97 = tpu.matmul %96, %9, %cst_24 {dimension_numbers = #tpu.dot_dimension_numbers<[1], [0], [0], [1], [0, 0, 1, 1], [], []>} : vector<1x32xf32>, vector<32x384xf32>, vector<1x384xf32> -> vector<1x384xf32>
    %98 = vector.extract_strided_slice %6 {offsets = [3, 0], sizes = [1, 128], strides = [1, 1]} : vector<8x128xf32> to vector<1x128xf32>
    %99 = vector.extract_strided_slice %97 {offsets = [0, 0], sizes = [1, 128], strides = [1, 1]} : vector<1x384xf32> to vector<1x128xf32>
    %100 = arith.addf %98, %99 : vector<1x128xf32>
    %101 = arith.negf %100 : vector<1x128xf32>
    %102 = math.exp %101 : vector<1x128xf32>
    %cst_25 = arith.constant 1.000000e+00 : f32
    %103 = vector.broadcast %cst_25 : f32 to vector<1x128xf32>
    %104 = arith.addf %103, %102 : vector<1x128xf32>
    %105 = arith.divf %103, %104 : vector<1x128xf32>
    %106 = vector.extract_strided_slice %7 {offsets = [3, 0], sizes = [1, 128], strides = [1, 1]} : vector<8x128xf32> to vector<1x128xf32>
    %107 = vector.extract_strided_slice %97 {offsets = [0, 128], sizes = [1, 128], strides = [1, 1]} : vector<1x384xf32> to vector<1x128xf32>
    %108 = arith.addf %106, %107 : vector<1x128xf32>
    %109 = arith.negf %108 : vector<1x128xf32>
    %110 = math.exp %109 : vector<1x128xf32>
    %cst_26 = arith.constant 1.000000e+00 : f32
    %111 = vector.broadcast %cst_26 : f32 to vector<1x128xf32>
    %112 = arith.addf %111, %110 : vector<1x128xf32>
    %113 = arith.divf %111, %112 : vector<1x128xf32>
    %114 = vector.extract_strided_slice %8 {offsets = [3, 0], sizes = [1, 128], strides = [1, 1]} : vector<8x128xf32> to vector<1x128xf32>
    %115 = vector.extract_strided_slice %97 {offsets = [0, 256], sizes = [1, 128], strides = [1, 1]} : vector<1x384xf32> to vector<1x128xf32>
    %116 = arith.addf %115, %10 : vector<1x128xf32>
    %117 = arith.mulf %105, %116 : vector<1x128xf32>
    %118 = arith.addf %114, %117 : vector<1x128xf32>
    %119 = math.tanh %118 : vector<1x128xf32>
    %120 = arith.subf %94, %119 : vector<1x128xf32>
    %121 = arith.mulf %113, %120 : vector<1x128xf32>
    %122 = arith.addf %119, %121 : vector<1x128xf32>
    %c3 = arith.constant 3 : index
    %c0_27 = arith.constant 0 : index
    %123 = vector.load %arg10[%c3, %c0_27] : memref<8x128xf32, #tpu.memory_space<vmem>>, vector<1x128xf32>
    tpu.vector_store %arg10[%c3, %c0_27], %122 {strides = array<i32>} : memref<8x128xf32, #tpu.memory_space<vmem>>, vector<1x128xf32>,
    %124 = vector.extract_strided_slice %122 {offsets = [0, 0], sizes = [1, 32], strides = [1, 1]} : vector<1x128xf32> to vector<1x32xf32>
    %cst_28 = arith.constant dense<0.000000e+00> : vector<1x384xf32>
    %125 = tpu.matmul %124, %9, %cst_28 {dimension_numbers = #tpu.dot_dimension_numbers<[1], [0], [0], [1], [0, 0, 1, 1], [], []>} : vector<1x32xf32>, vector<32x384xf32>, vector<1x384xf32> -> vector<1x384xf32>
    %126 = vector.extract_strided_slice %6 {offsets = [4, 0], sizes = [1, 128], strides = [1, 1]} : vector<8x128xf32> to vector<1x128xf32>
    %127 = vector.extract_strided_slice %125 {offsets = [0, 0], sizes = [1, 128], strides = [1, 1]} : vector<1x384xf32> to vector<1x128xf32>
    %128 = arith.addf %126, %127 : vector<1x128xf32>
    %129 = arith.negf %128 : vector<1x128xf32>
    %130 = math.exp %129 : vector<1x128xf32>
    %cst_29 = arith.constant 1.000000e+00 : f32
    %131 = vector.broadcast %cst_29 : f32 to vector<1x128xf32>
    %132 = arith.addf %131, %130 : vector<1x128xf32>
    %133 = arith.divf %131, %132 : vector<1x128xf32>
    %134 = vector.extract_strided_slice %7 {offsets = [4, 0], sizes = [1, 128], strides = [1, 1]} : vector<8x128xf32> to vector<1x128xf32>
    %135 = vector.extract_strided_slice %125 {offsets = [0, 128], sizes = [1, 128], strides = [1, 1]} : vector<1x384xf32> to vector<1x128xf32>
    %136 = arith.addf %134, %135 : vector<1x128xf32>
    %137 = arith.negf %136 : vector<1x128xf32>
    %138 = math.exp %137 : vector<1x128xf32>
    %cst_30 = arith.constant 1.000000e+00 : f32
    %139 = vector.broadcast %cst_30 : f32 to vector<1x128xf32>
    %140 = arith.addf %139, %138 : vector<1x128xf32>
    %141 = arith.divf %139, %140 : vector<1x128xf32>
    %142 = vector.extract_strided_slice %8 {offsets = [4, 0], sizes = [1, 128], strides = [1, 1]} : vector<8x128xf32> to vector<1x128xf32>
    %143 = vector.extract_strided_slice %125 {offsets = [0, 256], sizes = [1, 128], strides = [1, 1]} : vector<1x384xf32> to vector<1x128xf32>
    %144 = arith.addf %143, %10 : vector<1x128xf32>
    %145 = arith.mulf %133, %144 : vector<1x128xf32>
    %146 = arith.addf %142, %145 : vector<1x128xf32>
    %147 = math.tanh %146 : vector<1x128xf32>
    %148 = arith.subf %122, %147 : vector<1x128xf32>
    %149 = arith.mulf %141, %148 : vector<1x128xf32>
    %150 = arith.addf %147, %149 : vector<1x128xf32>
    %c4 = arith.constant 4 : index
    %c0_31 = arith.constant 0 : index
    %151 = vector.load %arg10[%c4, %c0_31] : memref<8x128xf32, #tpu.memory_space<vmem>>, vector<1x128xf32>
    tpu.vector_store %arg10[%c4, %c0_31], %150 {strides = array<i32>} : memref<8x128xf32, #tpu.memory_space<vmem>>, vector<1x128xf32>,
    %152 = vector.extract_strided_slice %150 {offsets = [0, 0], sizes = [1, 32], strides = [1, 1]} : vector<1x128xf32> to vector<1x32xf32>
    %cst_32 = arith.constant dense<0.000000e+00> : vector<1x384xf32>
    %153 = tpu.matmul %152, %9, %cst_32 {dimension_numbers = #tpu.dot_dimension_numbers<[1], [0], [0], [1], [0, 0, 1, 1], [], []>} : vector<1x32xf32>, vector<32x384xf32>, vector<1x384xf32> -> vector<1x384xf32>
    %154 = vector.extract_strided_slice %6 {offsets = [5, 0], sizes = [1, 128], strides = [1, 1]} : vector<8x128xf32> to vector<1x128xf32>
    %155 = vector.extract_strided_slice %153 {offsets = [0, 0], sizes = [1, 128], strides = [1, 1]} : vector<1x384xf32> to vector<1x128xf32>
    %156 = arith.addf %154, %155 : vector<1x128xf32>
    %157 = arith.negf %156 : vector<1x128xf32>
    %158 = math.exp %157 : vector<1x128xf32>
    %cst_33 = arith.constant 1.000000e+00 : f32
    %159 = vector.broadcast %cst_33 : f32 to vector<1x128xf32>
    %160 = arith.addf %159, %158 : vector<1x128xf32>
    %161 = arith.divf %159, %160 : vector<1x128xf32>
    %162 = vector.extract_strided_slice %7 {offsets = [5, 0], sizes = [1, 128], strides = [1, 1]} : vector<8x128xf32> to vector<1x128xf32>
    %163 = vector.extract_strided_slice %153 {offsets = [0, 128], sizes = [1, 128], strides = [1, 1]} : vector<1x384xf32> to vector<1x128xf32>
    %164 = arith.addf %162, %163 : vector<1x128xf32>
    %165 = arith.negf %164 : vector<1x128xf32>
    %166 = math.exp %165 : vector<1x128xf32>
    %cst_34 = arith.constant 1.000000e+00 : f32
    %167 = vector.broadcast %cst_34 : f32 to vector<1x128xf32>
    %168 = arith.addf %167, %166 : vector<1x128xf32>
    %169 = arith.divf %167, %168 : vector<1x128xf32>
    %170 = vector.extract_strided_slice %8 {offsets = [5, 0], sizes = [1, 128], strides = [1, 1]} : vector<8x128xf32> to vector<1x128xf32>
    %171 = vector.extract_strided_slice %153 {offsets = [0, 256], sizes = [1, 128], strides = [1, 1]} : vector<1x384xf32> to vector<1x128xf32>
    %172 = arith.addf %171, %10 : vector<1x128xf32>
    %173 = arith.mulf %161, %172 : vector<1x128xf32>
    %174 = arith.addf %170, %173 : vector<1x128xf32>
    %175 = math.tanh %174 : vector<1x128xf32>
    %176 = arith.subf %150, %175 : vector<1x128xf32>
    %177 = arith.mulf %169, %176 : vector<1x128xf32>
    %178 = arith.addf %175, %177 : vector<1x128xf32>
    %c5 = arith.constant 5 : index
    %c0_35 = arith.constant 0 : index
    %179 = vector.load %arg10[%c5, %c0_35] : memref<8x128xf32, #tpu.memory_space<vmem>>, vector<1x128xf32>
    tpu.vector_store %arg10[%c5, %c0_35], %178 {strides = array<i32>} : memref<8x128xf32, #tpu.memory_space<vmem>>, vector<1x128xf32>,
    %180 = vector.extract_strided_slice %178 {offsets = [0, 0], sizes = [1, 32], strides = [1, 1]} : vector<1x128xf32> to vector<1x32xf32>
    %cst_36 = arith.constant dense<0.000000e+00> : vector<1x384xf32>
    %181 = tpu.matmul %180, %9, %cst_36 {dimension_numbers = #tpu.dot_dimension_numbers<[1], [0], [0], [1], [0, 0, 1, 1], [], []>} : vector<1x32xf32>, vector<32x384xf32>, vector<1x384xf32> -> vector<1x384xf32>
    %182 = vector.extract_strided_slice %6 {offsets = [6, 0], sizes = [1, 128], strides = [1, 1]} : vector<8x128xf32> to vector<1x128xf32>
    %183 = vector.extract_strided_slice %181 {offsets = [0, 0], sizes = [1, 128], strides = [1, 1]} : vector<1x384xf32> to vector<1x128xf32>
    %184 = arith.addf %182, %183 : vector<1x128xf32>
    %185 = arith.negf %184 : vector<1x128xf32>
    %186 = math.exp %185 : vector<1x128xf32>
    %cst_37 = arith.constant 1.000000e+00 : f32
    %187 = vector.broadcast %cst_37 : f32 to vector<1x128xf32>
    %188 = arith.addf %187, %186 : vector<1x128xf32>
    %189 = arith.divf %187, %188 : vector<1x128xf32>
    %190 = vector.extract_strided_slice %7 {offsets = [6, 0], sizes = [1, 128], strides = [1, 1]} : vector<8x128xf32> to vector<1x128xf32>
    %191 = vector.extract_strided_slice %181 {offsets = [0, 128], sizes = [1, 128], strides = [1, 1]} : vector<1x384xf32> to vector<1x128xf32>
    %192 = arith.addf %190, %191 : vector<1x128xf32>
    %193 = arith.negf %192 : vector<1x128xf32>
    %194 = math.exp %193 : vector<1x128xf32>
    %cst_38 = arith.constant 1.000000e+00 : f32
    %195 = vector.broadcast %cst_38 : f32 to vector<1x128xf32>
    %196 = arith.addf %195, %194 : vector<1x128xf32>
    %197 = arith.divf %195, %196 : vector<1x128xf32>
    %198 = vector.extract_strided_slice %8 {offsets = [6, 0], sizes = [1, 128], strides = [1, 1]} : vector<8x128xf32> to vector<1x128xf32>
    %199 = vector.extract_strided_slice %181 {offsets = [0, 256], sizes = [1, 128], strides = [1, 1]} : vector<1x384xf32> to vector<1x128xf32>
    %200 = arith.addf %199, %10 : vector<1x128xf32>
    %201 = arith.mulf %189, %200 : vector<1x128xf32>
    %202 = arith.addf %198, %201 : vector<1x128xf32>
    %203 = math.tanh %202 : vector<1x128xf32>
    %204 = arith.subf %178, %203 : vector<1x128xf32>
    %205 = arith.mulf %197, %204 : vector<1x128xf32>
    %206 = arith.addf %203, %205 : vector<1x128xf32>
    %c6 = arith.constant 6 : index
    %c0_39 = arith.constant 0 : index
    %207 = vector.load %arg10[%c6, %c0_39] : memref<8x128xf32, #tpu.memory_space<vmem>>, vector<1x128xf32>
    tpu.vector_store %arg10[%c6, %c0_39], %206 {strides = array<i32>} : memref<8x128xf32, #tpu.memory_space<vmem>>, vector<1x128xf32>,
    %208 = vector.extract_strided_slice %206 {offsets = [0, 0], sizes = [1, 32], strides = [1, 1]} : vector<1x128xf32> to vector<1x32xf32>
    %cst_40 = arith.constant dense<0.000000e+00> : vector<1x384xf32>
    %209 = tpu.matmul %208, %9, %cst_40 {dimension_numbers = #tpu.dot_dimension_numbers<[1], [0], [0], [1], [0, 0, 1, 1], [], []>} : vector<1x32xf32>, vector<32x384xf32>, vector<1x384xf32> -> vector<1x384xf32>
    %210 = vector.extract_strided_slice %6 {offsets = [7, 0], sizes = [1, 128], strides = [1, 1]} : vector<8x128xf32> to vector<1x128xf32>
    %211 = vector.extract_strided_slice %209 {offsets = [0, 0], sizes = [1, 128], strides = [1, 1]} : vector<1x384xf32> to vector<1x128xf32>
    %212 = arith.addf %210, %211 : vector<1x128xf32>
    %213 = arith.negf %212 : vector<1x128xf32>
    %214 = math.exp %213 : vector<1x128xf32>
    %cst_41 = arith.constant 1.000000e+00 : f32
    %215 = vector.broadcast %cst_41 : f32 to vector<1x128xf32>
    %216 = arith.addf %215, %214 : vector<1x128xf32>
    %217 = arith.divf %215, %216 : vector<1x128xf32>
    %218 = vector.extract_strided_slice %7 {offsets = [7, 0], sizes = [1, 128], strides = [1, 1]} : vector<8x128xf32> to vector<1x128xf32>
    %219 = vector.extract_strided_slice %209 {offsets = [0, 128], sizes = [1, 128], strides = [1, 1]} : vector<1x384xf32> to vector<1x128xf32>
    %220 = arith.addf %218, %219 : vector<1x128xf32>
    %221 = arith.negf %220 : vector<1x128xf32>
    %222 = math.exp %221 : vector<1x128xf32>
    %cst_42 = arith.constant 1.000000e+00 : f32
    %223 = vector.broadcast %cst_42 : f32 to vector<1x128xf32>
    %224 = arith.addf %223, %222 : vector<1x128xf32>
    %225 = arith.divf %223, %224 : vector<1x128xf32>
    %226 = vector.extract_strided_slice %8 {offsets = [7, 0], sizes = [1, 128], strides = [1, 1]} : vector<8x128xf32> to vector<1x128xf32>
    %227 = vector.extract_strided_slice %209 {offsets = [0, 256], sizes = [1, 128], strides = [1, 1]} : vector<1x384xf32> to vector<1x128xf32>
    %228 = arith.addf %227, %10 : vector<1x128xf32>
    %229 = arith.mulf %217, %228 : vector<1x128xf32>
    %230 = arith.addf %226, %229 : vector<1x128xf32>
    %231 = math.tanh %230 : vector<1x128xf32>
    %232 = arith.subf %206, %231 : vector<1x128xf32>
    %233 = arith.mulf %225, %232 : vector<1x128xf32>
    %234 = arith.addf %231, %233 : vector<1x128xf32>
    %c7 = arith.constant 7 : index
    %c0_43 = arith.constant 0 : index
    %235 = vector.load %arg10[%c7, %c0_43] : memref<8x128xf32, #tpu.memory_space<vmem>>, vector<1x128xf32>
    tpu.vector_store %arg10[%c7, %c0_43], %234 {strides = array<i32>} : memref<8x128xf32, #tpu.memory_space<vmem>>, vector<1x128xf32>,
    %c0_44 = arith.constant 0 : index
    %c0_45 = arith.constant 0 : index
    %236 = vector.load %arg9[%c0_44, %c0_45] : memref<1x128xf32, #tpu.memory_space<vmem>>, vector<1x128xf32>
    tpu.vector_store %arg9[%c0_44, %c0_45], %234 {strides = array<i32>} : memref<1x128xf32, #tpu.memory_space<vmem>>, vector<1x128xf32>,
    %c0_46 = arith.constant 0 : index
    %c0_47 = arith.constant 0 : index
    %237 = vector.load %arg10[%c0_46, %c0_47] : memref<8x128xf32, #tpu.memory_space<vmem>>, vector<8x128xf32>
    %238 = vector.extract_strided_slice %237 {offsets = [0, 0], sizes = [8, 32], strides = [1, 1]} : vector<8x128xf32> to vector<8x32xf32>
    %c0_48 = arith.constant 0 : index
    %c0_49 = arith.constant 0 : index
    %239 = vector.load %arg6[%c0_48, %c0_49] : memref<32x128xf32, #tpu.memory_space<vmem>>, vector<32x128xf32>
    %cst_50 = arith.constant dense<0.000000e+00> : vector<8x128xf32>
    %240 = tpu.matmul %238, %239, %cst_50 {dimension_numbers = #tpu.dot_dimension_numbers<[1], [0], [0], [1], [0, 0, 1, 1], [], []>} : vector<8x32xf32>, vector<32x128xf32>, vector<8x128xf32> -> vector<8x128xf32>
    %c0_51 = arith.constant 0 : index
    %c0_52 = arith.constant 0 : index
    %241 = vector.load %arg7[%c0_51, %c0_52] : memref<1x128xf32, #tpu.memory_space<vmem>>, vector<1x128xf32>
    %242 = vector.broadcast %241 : vector<1x128xf32> to vector<8x128xf32>
    %243 = arith.addf %240, %242 : vector<8x128xf32>
    %cst_53 = arith.constant dense<0xFF800000> : vector<8xf32>
    %244 = vector.multi_reduction <maximumf>, %243, %cst_53 [1] : vector<8x128xf32> to vector<8xf32>
    %245 = vector.shape_cast %244 : vector<8xf32> to vector<8x1xf32>
    %246 = vector.broadcast %245 : vector<8x1xf32> to vector<8x128xf32>
    %247 = arith.subf %243, %246 : vector<8x128xf32>
    %248 = math.exp %247 : vector<8x128xf32>
    %cst_54 = arith.constant dense<0.000000e+00> : vector<8xf32>
    %249 = vector.multi_reduction <add>, %248, %cst_54 [1] : vector<8x128xf32> to vector<8xf32>
    %250 = vector.shape_cast %249 : vector<8xf32> to vector<8x1xf32>
    %251 = math.log %250 : vector<8x1xf32>
    %252 = vector.broadcast %251 : vector<8x1xf32> to vector<8x128xf32>
    %253 = arith.subf %247, %252 : vector<8x128xf32>
    %c0_55 = arith.constant 0 : index
    %c0_56 = arith.constant 0 : index
    %254 = vector.load %arg8[%c0_55, %c0_56] : memref<8x128xf32, #tpu.memory_space<vmem>>, vector<8x128xf32>
    tpu.vector_store %arg8[%c0_55, %c0_56], %253 {strides = array<i32>} : memref<8x128xf32, #tpu.memory_space<vmem>>, vector<8x128xf32>,
    return
  }
}

</mosaic_0001>

<bundles_post_ra>
// kernel: gru_forward.1
= control target key start
LH: loop header
LB: loop body
LE: loop exit
PB: predicated region body
PF: predicated region fallthrough
CT: control target
= control target key end

     0   :  { %15 = vsyncpa [#allocation4], 0  ;;  %s2673_s0 = inlined_call_operand.hbm [shape: f32[8,16], index: 0, kind: input, shape index: {}]   ;;  %s2674_s1 = inlined_call_operand.vmem [shape: f32[1,128], index: 1, kind: input, shape index: {}]   ;;  %s2675_s2 = inlined_call_operand.hbm [shape: f32[16,384], index: 2, kind: input, shape index: {}]   ;;  %s2676_s3 = inlined_call_operand.hbm [shape: f32[32,384], index: 3, kind: input, shape index: {}]   ;;  %s2677_s4 = inlined_call_operand.hbm [shape: f32[1,384], index: 4, kind: input, shape index: {}]   ;;  %s2678_s5 = inlined_call_operand.vmem [shape: f32[1,128], index: 5, kind: input, shape index: {}]   ;;  %s2679_s6 = inlined_call_operand.vmem [shape: f32[32,128], index: 6, kind: input, shape index: {}]   ;;  %s2680_s7 = inlined_call_operand.vmem [shape: f32[1,128], index: 7, kind: input, shape index: {}]   ;;  %s2681_s8 = inlined_call_operand.hbm [shape: f32[8,128], index: 8, kind: output, shape index: {0}]   ;;  %s2682_s9 = inlined_call_operand.vmem [shape: f32[1,128], index: 9, kind: output, shape index: {1}]  }
   0x1   :  { %16 = vsyncpa [#allocation7], 0 }
   0x2   :  { %17 = vsyncpa [#allocation10], 0 }
   0x3   :  { %18 = vsyncpa [#allocation5], 0  ;;  %s2351_s30 = smov [#allocation6]   ;;  %s2233_s13 = scalar_lea.hbm %s2675_s2, 768 }
   0x4   :  { %s36_s10 = sshll.u32 %s2351_s30, 4  ;;  %p2234_p0 = scmp.ne.s32.totalorder %s2675_s2, %s2233_s13  ;;  %s37_s10 = int_to_ptr.vmem [resolvable:$true] %s36_s10 }
   0x5   :  { %p2237_p1 = scmp.lt.u32.totalorder %s2233_s13, %s2675_s2 }
   0x7   :  { %p2239_p2 = pnand %p2237_p1, %p2234_p0 }
   0x9   :  { %2242 = shalt.err (!%p2239_p2)
}
   0xa   :  { %s2243_s18 = scalar_lea.vmem %s37_s10, 768  ;;  %p2248_p4 = scmp.lt.s32.totalorder %s37_s10, %s37_s10 }
   0xb   :  { %p2244_p3 = scmp.ne.s32.totalorder %s37_s10, %s2243_s18  ;;  %p2249_p5 = scmp.lt.s32.totalorder %s2243_s18, %s2243_s18 }
   0xd   :  { %p2250_p6 = por %p2249_p5, %p2248_p4 }
   0xf   :  { %p2251_p7 = pnand %p2250_p6, %p2244_p3 }
  0x11   :  { %2254 = shalt.err (!%p2251_p7)
}
  0x12   :  { %s2352_s19 = smov 384   ;;  %s2353_s20 = smov 24  }
  0x13   :  { %42 = dma.hbm_to_vmem [thread:$0]  %s2675_s2, 768, %s37_s10, [#allocation7], %s2352_s19, %s2352_s19, %s2353_s20  }
  0x14   :  { %s2354_s23 = smov [#allocation3]   ;;  %s2355_s25 = smov [#allocation8]  }
  0x15   :  { %s25_s24 = sshll.u32 %s2354_s23, 4  ;;  %s48_s26 = sshll.u32 %s2355_s25, 4  ;;  %s26_s24 = int_to_ptr.vmem [resolvable:$true] %s25_s24  ;;  %s49_s26 = int_to_ptr.vmem [resolvable:$true] %s48_s26 }
  0x16   :  { %s2255_s29 = scalar_lea.hbm %s2673_s0, 128 }
  0x17   :  { %p2256_p8 = scmp.ne.s32.totalorder %s2673_s0, %s2255_s29  ;;  %p2259_p9 = scmp.lt.u32.totalorder %s2255_s29, %s2673_s0 }
  0x19   :  { %p2261_p10 = pnand %p2259_p9, %p2256_p8 }
  0x1b   :  { %2264 = shalt.err (!%p2261_p10)
}
  0x1c   :  { %s2265_s2 = scalar_lea.vmem %s26_s24, 128  ;;  %p2270_p12 = scmp.lt.s32.totalorder %s26_s24, %s26_s24 }
  0x1d   :  { %p2266_p11 = scmp.ne.s32.totalorder %s26_s24, %s2265_s2  ;;  %p2271_p13 = scmp.lt.s32.totalorder %s2265_s2, %s2265_s2 }
  0x1f   :  { %p2272_p0 = por %p2271_p13, %p2270_p12 }
  0x21   :  { %p2273_p1 = pnand %p2272_p0, %p2266_p11 }
  0x23   :  { %2276 = shalt.err (!%p2273_p1)
}
  0x24   :  { %28 = dma.hbm_to_vmem [thread:$0]  %s2673_s0, 128, %s26_s24, [#allocation4]  }
  0x25   :  { %s2277_s17 = scalar_lea.hbm %s2676_s3, 1536 }
  0x26   :  { %p2278_p2 = scmp.ne.s32.totalorder %s2676_s3, %s2277_s17  ;;  %p2281_p3 = scmp.lt.u32.totalorder %s2277_s17, %s2676_s3 }
  0x28   :  { %p2283_p4 = pnand %p2281_p3, %p2278_p2 }
  0x2a   :  { %2286 = shalt.err (!%p2283_p4)
}
  0x2b   :  { %s2287_s25 = scalar_lea.vmem %s49_s26, 1536  ;;  %p2292_p6 = scmp.lt.s32.totalorder %s49_s26, %s49_s26 }
  0x2c   :  { %p2288_p5 = scmp.ne.s32.totalorder %s49_s26, %s2287_s25  ;;  %p2293_p7 = scmp.lt.s32.totalorder %s2287_s25, %s2287_s25 }
  0x2e   :  { %p2294_p8 = por %p2293_p7, %p2292_p6 }
  0x30   :  { %p2295_p9 = pnand %p2294_p8, %p2288_p5 }
  0x32   :  { %2298 = shalt.err (!%p2295_p9)
}
  0x33   :  { %54 = dma.hbm_to_vmem [thread:$0]  %s2676_s3, 1536, %s49_s26, [#allocation7], %s2352_s19, %s2352_s19, %s2353_s20  }
  0x34   :  { %s2356_s27 = smov [#allocation9]   ;;  %s2299_s11 = scalar_lea.hbm %s2677_s4, 48 }
  0x35   :  { %s61_s28 = sshll.u32 %s2356_s27, 4  ;;  %p2300_p10 = scmp.ne.s32.totalorder %s2677_s4, %s2299_s11  ;;  %s62_s28 = int_to_ptr.vmem [resolvable:$true] %s61_s28 }
  0x36   :  { %p2303_p11 = scmp.lt.u32.totalorder %s2299_s11, %s2677_s4 }
  0x38   :  { %p2305_p12 = pnand %p2303_p11, %p2300_p10 }
  0x3a   :  { %2308 = shalt.err (!%p2305_p12)
}
  0x3b   :  { %s2309_s14 = scalar_lea.vmem %s62_s28, 48  ;;  %s2313_s3 = scalar_lea.vmem %s62_s28, 64 }
  0x3c   :  { %p2310_p13 = scmp.ne.s32.totalorder %s62_s28, %s2309_s14  ;;  %p2314_p0 = scmp.lt.s32.totalorder %s62_s28, %s62_s28 }
  0x3d   :  { %p2315_p1 = scmp.lt.s32.totalorder %s2313_s3, %s2309_s14 }
  0x3f   :  { %p2316_p2 = por %p2315_p1, %p2314_p0 }
  0x41   :  { %p2317_p3 = pnand %p2316_p2, %p2310_p13 }
  0x43   :  { %2320 = shalt.err (!%p2317_p3)
}
  0x44   :  { %64 = dma.hbm_to_vmem [thread:$0]  %s2677_s4, 48, %s62_s28, [#allocation10]  }
  0x45   :  { %2343 = dma.done.wait [#allocation4], 128  }
  0x46   :  { %2344 = vsyncadd [#allocation4], 4294967168 }
  0x47   :  { %2345 = dma.done.wait [#allocation7], 2304  }
  0x48   :  { %2346 = vsyncadd [#allocation7], 4294964992 }
  0x49   :  { %2347 = dma.done.wait [#allocation10], 48  }
  0x4a   :  { %2348 = vsyncadd [#allocation10], 4294967248  ;;  %v2357_v0 = vmov 0.0   ;;  %v253_v1 = vld [vmem:[#allocation8 + $0x8] sm:$0xff]  ;;  %v256_v2 = vld [vmem:[#allocation8 + $0x20] sm:$0xff]  ;;  %vm107_vm0 = vcmask 130048   ;;  %v92_v31 = vlaneseq }
  0x4b   :  { %175 = vmatprep.mubr.f32.mxu1 %v2357_v0  ;;  %334 = vmatprep.mubr.f32.mxu0 %v2357_v0  ;;  %v85_v3 = vld [vmem:[#allocation6 + $0x8] sm:$0xff]  ;;  %v2467_v4 = vpack.c.bf16 %v256_v2, %v253_v1  ;;  %v88_v5 = vld [vmem:[#allocation6 + $0x20] sm:$0xff]  ;;  %v252_v6 = vld [vmem:[#allocation8] sm:$0xff]  ;;  %v2358_v22 = vmov 0.0|0.0   ;;  %vm266_vm1 = vcmask 261120   ;;  %vm2359_vm2 = vmmov 0  }
  0x4c   :  { %v255_v7 = vld [vmem:[#allocation8 + $0x18] sm:$0xff]  ;;  %v2014_v8 = vpack.c.bf16 %v88_v5, %v85_v3  ;;  %v84_v10 = vld [vmem:[#allocation6] sm:$0xff]  ;;  %v87_v11 = vld [vmem:[#allocation6 + $0x18] sm:$0xff]  ;;  %v93_v32 = vshrl.u32 %v92_v31, 7 }
  0x4d   :  { %v2469_v9 = vpack.c.bf16 %v255_v7, %v252_v6  ;;  %v259_v12 = vld [vmem:[#allocation8 + $0x38] sm:$0xff]  ;;  %2022 = vmatprep.subr.bf16.mxu0 %v2467_v4  ;;  %v2016_v13 = vpack.c.bf16 %v87_v11, %v84_v10  ;;  %v262_v14 = vld [vmem:[#allocation8 + $0x50] sm:$0xff]  ;;  %v261_v17 = vld [vmem:[#allocation8 + $0x48] sm:$0xff] }
  0x4e   :  { %v258_v15 = vld [vmem:[#allocation8 + $0x30] sm:$0xff]  ;;  %2015 = vmatprep.subr.bf16.mxu1 %v2014_v8  ;;  %v2473_v16 = vpack.c.bf16 %v262_v14, %v259_v12  ;;  %v86_v18 = vld [vmem:[#allocation6 + $0x10] sm:$0xff]  ;;  %v83_v19 = vld [vmem:[#allocation3] sm:$0xff]  ;;  %v94_v33 = vsub.s32 0, %v93_v32  ;;  %v98_v37 = vsub.s32 1, %v93_v32  ;;  %v102_v54 = vsub.s32 2, %v93_v32 }
  0x4f   :  { %2024 = vmatpush1.bf16.msra.mxu0 %v2469_v9  ;;  %2017 = vmatpush1.bf16.msra.mxu1 %v2016_v13  ;;  %v2475_v20 = vpack.c.bf16 %v261_v17, %v258_v15  ;;  %v89_v21 = vld [vmem:[#allocation6 + $0x28] sm:$0xff]  ;;  %v254_v24 = vld [vmem:[#allocation8 + $0x10] sm:$0xff]  ;;  %v257_v25 = vld [vmem:[#allocation8 + $0x28] sm:$0xff] }
  0x50   :  { %2026 = vmatprep.subr.bf16.mxu0 %v2473_v16  ;;  %2018 = vmatprep.subr.bf16.mxu1 %v2358_v22  ;;  %v2019_v23 = vpack.c.bf16 %v89_v21, %v86_v18  ;;  %v2484_v26 = vld [vmem:[%s2674_s1] sm:$0x1]  ;;  %v2488_v27 = vpack.c.bf16 %v257_v25, %v254_v24  ;;  %v263_v29 = vld [vmem:[#allocation8 + $0x58] sm:$0xff] }
  0x51   :  { %v260_v28 = vld [vmem:[#allocation8 + $0x40] sm:$0xff] }
  0x52   :  { %1824 = vmatmul.mubr.msk.f32.vlgmr.msra.gmra.mrb[0].mxu1 %vm107_vm0, %v83_v19  ;;  %v2497_v30 = vpack.c.bf16 %v263_v29, %v260_v28  ;;  %v90_v34 = vld [vmem:[#allocation9] sm:$0x7] }
  0x53   :  { %2028 = vmatpush1.bf16.msra.mxu0 %v2475_v20  ;;  %2020 = vmatpush3.bf16.msra.mxu1 %v2019_v23  ;;  %v95_v35 = vrot.slane %v90_v34, %v94_v33  ;;  %v99_v41 = vrot.slane %v90_v34, %v98_v37  ;;  %v2525_v55 = vld [vmem:[%s2678_s5] sm:$0x1]  ;;  %v103_v56 = vrot.slane %v90_v34, %v102_v54 }
  0x54   :  { %1912 = vmatprep.mubr.msk.f32.mxu1 %vm2359_vm2, %v2357_v0  ;;  %2029 = vmatprep.subr.bf16.mxu1 %v2358_v22 }
  0x55   :  { %2036 = vmatprep.subr.bf16.mxu0 %v2467_v4 }
  0x56   :  { %1826 = vmatmul.mubr.msk.f32.vlgmr.msra.gmra.mrb[0].mxu0 %vm266_vm1, %v2484_v26  ;;  %1913 = vmatmul.mubr.msk.f32.vlgmr.msra.gmra.mrb[2].mxu1 %vm107_vm0, %v83_v19 }
  0x57   :  { %2038 = vmatpush1.bf16.msra.mxu0 %v2469_v9  ;;  %2031 = vmatpush3.bf16.msra.mxu1 %v2488_v27 }
  0x58   :  { %1923 = vmatprep.mubr.msk.f32.mxu1 %vm2359_vm2, %v2357_v0  ;;  %2032 = vmatprep.subr.bf16.mxu1 %v2358_v22 }
  0x59   :  { %2040 = vmatprep.subr.bf16.mxu0 %v2473_v16  ;;  %500 = vmatprep.mubr.f32.mxu0 %v2357_v0 }
  0x5b   :  { %2042 = vmatpush1.bf16.msra.mxu0 %v2475_v20  ;;  %2034 = vmatpush3.bf16.msra.mxu1 %v2497_v30 }
  0x5c   :  { %2050 = vmatprep.subr.bf16.mxu0 %v2467_v4  ;;  %2043 = vmatprep.subr.bf16.mxu1 %v2358_v22 }
  0x5e   :  { %1924 = vmatmul.mubr.msk.f32.vlgmr.msra.gmra.mrb[4].mxu1 %vm266_vm1, %v2484_v26 }
  0x5f   :  { %2045 = vmatpush3.bf16.msra.mxu1 %v2488_v27  ;;  %1934 = vmatprep.mubr.msk.f32.mxu1 %vm2359_vm2, %v2357_v0 }
  0x60   :  { %2046 = vmatprep.subr.bf16.mxu1 %v2358_v22 }
  0x63   :  { %2048 = vmatpush3.bf16.msra.mxu1 %v2497_v30 }
  0x64   :  { %2057 = vmatprep.subr.bf16.mxu1 %v2358_v22 }
 0x125   :  { %v177_v36 = vpop.f32.mrb[0].mxu1 }
 0x126   :  { %v2516_v38 = vadd.f32 %v177_v36, %v95_v35  ;;  %v179_v39 = vpop.f32.mrb[1].mxu1 }
 0x127   :  { %v2519_v47 = vadd.f32 %v179_v39, %v99_v41 }
 0x129   :  { %v336_v40 = vpop.f32.mrb[0].mxu0  ;;  %v248_v44 = vpop.f32.mrb[2].mxu1 }
 0x12a   :  { %v411_v42 = vadd.f32 %v336_v40, %v2516_v38  ;;  %v338_v43 = vpop.f32.mrb[1].mxu0  ;;  %v1914_v45 = vpop.f32.mrb[3].mxu1  ;;  %v2528_v60 = vadd.f32 %v248_v44, %v103_v56 }
 0x12b   :  { %v418_v48 = vadd.f32 %v338_v43, %v2519_v47 }
 0x12c   :  { %v1828_v46 = vmul.f32 -1.442695, %v411_v42 }
 0x12d   :  { %v1829_v51 = vmul.f32 -1.442695, %v418_v48 }
 0x12e   :  { %2149 = vpow2.f32 %v1828_v46 }
 0x12f   :  { %2151 = vpow2.f32 %v1829_v51 }
 0x131   :  { %v407_v49 = vpop.f32.mrb[4].mxu1 }
 0x132   :  { %v1925_v50 = vpop.f32.mrb[5].mxu1  ;;  %v425_v57 = vadd.f32 %v407_v49, %v2525_v55 }
 0x138   :  { %v2150_v52 = vpop.eup %2149 }
 0x139   :  { %v415_v53 = vadd.f32 1.0, %v2150_v52  ;;  %v2152_v58 = vpop.eup %2151 }
 0x13a   :  { %v422_v62 = vadd.f32 1.0, %v2152_v58 }
 0x13b   :  { %2153 = vrcp.f32 %v415_v53 }
 0x145   :  { %v2154_v59 = vpop.eup %2153 }
 0x146   :  { %v426_v61 = vmul.f32 %v2154_v59, %v425_v57 }
 0x148   :  { %v427_v63 = vadd.f32 %v426_v61, %v2528_v60 }
 0x14a   :  { %2155 = vtanh.f32 %v427_v63 }
 0x14b   :  { %2157 = vrcp.f32 %v422_v62 }
 0x154   :  { %v2156_v1 = vpop.eup %2155 }
 0x155   :  { %v429_v2 = vsub.f32 %v2484_v26, %v2156_v1  ;;  %v2158_v3 = vpop.eup %2157 }
 0x157   :  { %v430_v5 = vmul.f32 %v2158_v3, %v429_v2 }
 0x159   :  { %v431_v6 = vadd.f32 %v2156_v1, %v430_v5 }
 0x15b   :  { %432 = vst [vmem:[#allocation2] sm:$0x1] %v431_v6  ;;  %1830 = vmatmul.mubr.msk.f32.vlgmr.msra.gmra.mrb[2].mxu0 %vm266_vm1, %v431_v6  ;;  %1935 = vmatmul.mubr.msk.f32.vlgmr.msra.gmra.mrb[6].mxu1 %vm266_vm1, %v431_v6 }
 0x15c   :  { %2052 = vmatpush1.bf16.msra.mxu0 %v2469_v9  ;;  %2059 = vmatpush3.bf16.msra.mxu1 %v2488_v27 }
 0x15d   :  { %2054 = vmatprep.subr.bf16.mxu0 %v2473_v16  ;;  %2060 = vmatprep.subr.bf16.mxu1 %v2358_v22 }
 0x15e   :  { %682 = vmatprep.mubr.f32.mxu0 %v2357_v0  ;;  %1945 = vmatprep.mubr.msk.f32.mxu1 %vm2359_vm2, %v2357_v0 }
 0x160   :  { %2056 = vmatpush1.bf16.msra.mxu0 %v2475_v20  ;;  %2062 = vmatpush3.bf16.msra.mxu1 %v2497_v30 }
 0x161   :  { %2064 = vmatprep.subr.bf16.mxu0 %v2467_v4  ;;  %2071 = vmatprep.subr.bf16.mxu1 %v2358_v22 }
 0x22e   :  { %v502_v7 = vpop.f32.mrb[2].mxu0  ;;  %v573_v8 = vpop.f32.mrb[6].mxu1 }
 0x22f   :  { %v578_v10 = vrot.slane %v502_v7, 7  ;;  %v504_v11 = vpop.f32.mrb[3].mxu0  ;;  %v1936_v12 = vpop.f32.mrb[7].mxu1  ;;  %v597_v23 = vadd.f32 %v573_v8, %v2525_v55 }
 0x230   :  { %v588_v15 = vrot.slane %v504_v11, 7 }
 0x231   :  { %v580_v13 = vadd.f32 %v578_v10, %v2516_v38  ;;  %v599_v24 = vrot.slane %v597_v23, 7 }
 0x232   :  { %v590_v17 = vadd.f32 %v588_v15, %v2519_v47 }
 0x233   :  { %v1832_v14 = vmul.f32 -1.442695, %v580_v13 }
 0x234   :  { %v1833_v21 = vmul.f32 -1.442695, %v590_v17 }
 0x235   :  { %2159 = vpow2.f32 %v1832_v14 }
 0x23f   :  { %v2160_v18 = vpop.eup %2159 }
 0x240   :  { %v584_v19 = vadd.f32 1.0, %v2160_v18 }
 0x242   :  { %2161 = vrcp.f32 %v584_v19 }
 0x243   :  { %2163 = vpow2.f32 %v1833_v21 }
 0x24c   :  { %v2162_v25 = vpop.eup %2161 }
 0x24d   :  { %v601_v26 = vmul.f32 %v2162_v25, %v599_v24  ;;  %v2164_v29 = vpop.eup %2163 }
 0x24e   :  { %v594_v31 = vadd.f32 1.0, %v2164_v29 }
 0x24f   :  { %v602_v28 = vadd.f32 %v601_v26, %v2528_v60 }
 0x251   :  { %2165 = vtanh.f32 %v602_v28 }
 0x252   :  { %2167 = vrcp.f32 %v594_v31 }
 0x25b   :  { %v2166_v32 = vpop.eup %2165 }
 0x25c   :  { %v605_v33 = vrot.slane %v2166_v32, 1  ;;  %v2168_v36 = vpop.eup %2167 }
 0x25e   :  { %v607_v34 = vsub.f32 %v431_v6, %v605_v33 }
 0x260   :  { %v609_v35 = vrot.slane %v607_v34, 7 }
 0x262   :  { %v611_v37 = vmul.f32 %v2168_v36, %v609_v35 }
 0x264   :  { %v612_v39 = vadd.f32 %v2166_v32, %v611_v37 }
 0x266   :  { %613 = vst [vmem:[#allocation2] sm:$0x2] %v612_v39  ;;  %v615_v40 = vrot.slane %v612_v39, 1 }
 0x268   :  { %1834 = vmatmul.mubr.msk.f32.vlgmr.msra.gmra.mrb[4].mxu0 %vm266_vm1, %v615_v40  ;;  %1946 = vmatmul.mubr.msk.f32.vlgmr.msra.gmra.mrb[8].mxu1 %vm266_vm1, %v615_v40 }
 0x269   :  { %2066 = vmatpush1.bf16.msra.mxu0 %v2469_v9  ;;  %2073 = vmatpush3.bf16.msra.mxu1 %v2488_v27 }
 0x26a   :  { %2068 = vmatprep.subr.bf16.mxu0 %v2473_v16  ;;  %2074 = vmatprep.subr.bf16.mxu1 %v2358_v22 }
 0x26b   :  { %864 = vmatprep.mubr.f32.mxu0 %v2357_v0  ;;  %1956 = vmatprep.mubr.msk.f32.mxu1 %vm2359_vm2, %v2357_v0 }
 0x26d   :  { %2070 = vmatpush1.bf16.msra.mxu0 %v2475_v20  ;;  %2076 = vmatpush3.bf16.msra.mxu1 %v2497_v30 }
 0x26e   :  { %2078 = vmatprep.subr.bf16.mxu0 %v2467_v4  ;;  %2085 = vmatprep.subr.bf16.mxu1 %v2358_v22 }
 0x33b   :  { %v684_v41 = vpop.f32.mrb[4].mxu0  ;;  %v755_v42 = vpop.f32.mrb[8].mxu1 }
 0x33c   :  { %v760_v43 = vrot.slane %v684_v41, 6  ;;  %v686_v44 = vpop.f32.mrb[5].mxu0  ;;  %v1947_v45 = vpop.f32.mrb[9].mxu1  ;;  %v779_v54 = vadd.f32 %v755_v42, %v2525_v55 }
 0x33d   :  { %v770_v49 = vrot.slane %v686_v44, 6 }
 0x33e   :  { %v762_v46 = vadd.f32 %v760_v43, %v2516_v38  ;;  %v781_v56 = vrot.slane %v779_v54, 6 }
 0x33f   :  { %v772_v50 = vadd.f32 %v770_v49, %v2519_v47 }
 0x340   :  { %v1836_v48 = vmul.f32 -1.442695, %v762_v46 }
 0x341   :  { %v1837_v53 = vmul.f32 -1.442695, %v772_v50 }
 0x342   :  { %2169 = vpow2.f32 %v1836_v48 }
 0x34c   :  { %v2170_v51 = vpop.eup %2169 }
 0x34d   :  { %v766_v52 = vadd.f32 1.0, %v2170_v51 }
 0x34f   :  { %2171 = vrcp.f32 %v766_v52 }
 0x350   :  { %2173 = vpow2.f32 %v1837_v53 }
 0x359   :  { %v2172_v57 = vpop.eup %2171 }
 0x35a   :  { %v783_v58 = vmul.f32 %v2172_v57, %v781_v56  ;;  %v2174_v61 = vpop.eup %2173 }
 0x35b   :  { %v776_v62 = vadd.f32 1.0, %v2174_v61 }
 0x35c   :  { %v784_v59 = vadd.f32 %v783_v58, %v2528_v60 }
 0x35e   :  { %2175 = vtanh.f32 %v784_v59 }
 0x35f   :  { %2177 = vrcp.f32 %v776_v62 }
 0x368   :  { %v2176_v63 = vpop.eup %2175 }
 0x369   :  { %v787_v1 = vrot.slane %v2176_v63, 1  ;;  %v2178_v5 = vpop.eup %2177 }
 0x36b   :  { %v789_v2 = vsub.f32 %v612_v39, %v787_v1 }
 0x36d   :  { %v791_v3 = vrot.slane %v789_v2, 7 }
 0x36f   :  { %v793_v6 = vmul.f32 %v2178_v5, %v791_v3 }
 0x371   :  { %v794_v7 = vadd.f32 %v2176_v63, %v793_v6 }
 0x373   :  { %795 = vst [vmem:[#allocation2] sm:$0x4] %v794_v7  ;;  %v797_v8 = vrot.slane %v794_v7, 2 }
 0x375   :  { %1838 = vmatmul.mubr.msk.f32.vlgmr.msra.gmra.mrb[6].mxu0 %vm266_vm1, %v797_v8  ;;  %1957 = vmatmul.mubr.msk.f32.vlgmr.msra.gmra.mrb[10].mxu1 %vm266_vm1, %v797_v8 }
 0x376   :  { %2080 = vmatpush1.bf16.msra.mxu0 %v2469_v9  ;;  %2087 = vmatpush3.bf16.msra.mxu1 %v2488_v27 }
 0x377   :  { %2082 = vmatprep.subr.bf16.mxu0 %v2473_v16  ;;  %2088 = vmatprep.subr.bf16.mxu1 %v2358_v22 }
 0x378   :  { %1046 = vmatprep.mubr.f32.mxu0 %v2357_v0  ;;  %1967 = vmatprep.mubr.msk.f32.mxu1 %vm2359_vm2, %v2357_v0 }
 0x37a   :  { %2084 = vmatpush1.bf16.msra.mxu0 %v2475_v20  ;;  %2090 = vmatpush3.bf16.msra.mxu1 %v2497_v30 }
 0x37b   :  { %2092 = vmatprep.subr.bf16.mxu0 %v2467_v4  ;;  %2099 = vmatprep.subr.bf16.mxu1 %v2358_v22 }
 0x448   :  { %v866_v10 = vpop.f32.mrb[6].mxu0  ;;  %v937_v11 = vpop.f32.mrb[10].mxu1 }
 0x449   :  { %v942_v12 = vrot.slane %v866_v10, 5  ;;  %v868_v13 = vpop.f32.mrb[7].mxu0  ;;  %v1958_v14 = vpop.f32.mrb[11].mxu1  ;;  %v961_v25 = vadd.f32 %v937_v11, %v2525_v55 }
 0x44a   :  { %v952_v18 = vrot.slane %v868_v13, 5 }
 0x44b   :  { %v944_v15 = vadd.f32 %v942_v12, %v2516_v38  ;;  %v963_v26 = vrot.slane %v961_v25, 5 }
 0x44c   :  { %v954_v19 = vadd.f32 %v952_v18, %v2519_v47 }
 0x44d   :  { %v1840_v17 = vmul.f32 -1.442695, %v944_v15 }
 0x44e   :  { %v1841_v24 = vmul.f32 -1.442695, %v954_v19 }
 0x44f   :  { %2179 = vpow2.f32 %v1840_v17 }
 0x459   :  { %v2180_v21 = vpop.eup %2179 }
 0x45a   :  { %v948_v23 = vadd.f32 1.0, %v2180_v21 }
 0x45c   :  { %2181 = vrcp.f32 %v948_v23 }
 0x45d   :  { %2183 = vpow2.f32 %v1841_v24 }
 0x466   :  { %v2182_v28 = vpop.eup %2181 }
 0x467   :  { %v965_v29 = vmul.f32 %v2182_v28, %v963_v26  ;;  %v2184_v32 = vpop.eup %2183 }
 0x468   :  { %v958_v33 = vadd.f32 1.0, %v2184_v32 }
 0x469   :  { %v966_v31 = vadd.f32 %v965_v29, %v2528_v60 }
 0x46b   :  { %2185 = vtanh.f32 %v966_v31 }
 0x46c   :  { %2187 = vrcp.f32 %v958_v33 }
 0x475   :  { %v2186_v34 = vpop.eup %2185 }
 0x476   :  { %v969_v35 = vrot.slane %v2186_v34, 1  ;;  %v2188_v39 = vpop.eup %2187 }
 0x478   :  { %v971_v36 = vsub.f32 %v794_v7, %v969_v35 }
 0x47a   :  { %v973_v37 = vrot.slane %v971_v36, 7 }
 0x47c   :  { %v975_v40 = vmul.f32 %v2188_v39, %v973_v37 }
 0x47e   :  { %v976_v41 = vadd.f32 %v2186_v34, %v975_v40 }
 0x480   :  { %977 = vst [vmem:[#allocation2] sm:$0x8] %v976_v41  ;;  %v979_v42 = vrot.slane %v976_v41, 3 }
 0x482   :  { %1842 = vmatmul.mubr.msk.f32.vlgmr.msra.gmra.mrb[8].mxu0 %vm266_vm1, %v979_v42  ;;  %1968 = vmatmul.mubr.msk.f32.vlgmr.msra.gmra.mrb[12].mxu1 %vm266_vm1, %v979_v42 }
 0x483   :  { %2094 = vmatpush1.bf16.msra.mxu0 %v2469_v9  ;;  %2101 = vmatpush3.bf16.msra.mxu1 %v2488_v27 }
 0x484   :  { %2096 = vmatprep.subr.bf16.mxu0 %v2473_v16  ;;  %2102 = vmatprep.subr.bf16.mxu1 %v2358_v22 }
 0x485   :  { %1228 = vmatprep.mubr.f32.mxu0 %v2357_v0  ;;  %1978 = vmatprep.mubr.msk.f32.mxu1 %vm2359_vm2, %v2357_v0 }
 0x487   :  { %2098 = vmatpush1.bf16.msra.mxu0 %v2475_v20  ;;  %2104 = vmatpush3.bf16.msra.mxu1 %v2497_v30 }
 0x488   :  { %2106 = vmatprep.subr.bf16.mxu0 %v2467_v4  ;;  %2113 = vmatprep.subr.bf16.mxu1 %v2358_v22 }
 0x555   :  { %v1048_v43 = vpop.f32.mrb[8].mxu0  ;;  %v1119_v44 = vpop.f32.mrb[12].mxu1 }
 0x556   :  { %v1124_v45 = vrot.slane %v1048_v43, 4  ;;  %v1050_v46 = vpop.f32.mrb[9].mxu0  ;;  %v1969_v48 = vpop.f32.mrb[13].mxu1  ;;  %v1143_v57 = vadd.f32 %v1119_v44, %v2525_v55 }
 0x557   :  { %v1134_v51 = vrot.slane %v1050_v46, 4 }
 0x558   :  { %v1126_v49 = vadd.f32 %v1124_v45, %v2516_v38  ;;  %v1145_v58 = vrot.slane %v1143_v57, 4 }
 0x559   :  { %v1136_v52 = vadd.f32 %v1134_v51, %v2519_v47 }
 0x55a   :  { %v1844_v50 = vmul.f32 -1.442695, %v1126_v49 }
 0x55b   :  { %v1845_v56 = vmul.f32 -1.442695, %v1136_v52 }
 0x55c   :  { %2189 = vpow2.f32 %v1844_v50 }
 0x566   :  { %v2190_v53 = vpop.eup %2189 }
 0x567   :  { %v1130_v54 = vadd.f32 1.0, %v2190_v53 }
 0x569   :  { %2191 = vrcp.f32 %v1130_v54 }
 0x56a   :  { %2193 = vpow2.f32 %v1845_v56 }
 0x573   :  { %v2192_v59 = vpop.eup %2191 }
 0x574   :  { %v1147_v61 = vmul.f32 %v2192_v59, %v1145_v58  ;;  %v2194_v63 = vpop.eup %2193 }
 0x575   :  { %v1140_v1 = vadd.f32 1.0, %v2194_v63 }
 0x576   :  { %v1148_v62 = vadd.f32 %v1147_v61, %v2528_v60 }
 0x578   :  { %2195 = vtanh.f32 %v1148_v62 }
 0x579   :  { %2197 = vrcp.f32 %v1140_v1 }
 0x582   :  { %v2196_v2 = vpop.eup %2195 }
 0x583   :  { %v1151_v3 = vrot.slane %v2196_v2, 1  ;;  %v2198_v7 = vpop.eup %2197 }
 0x585   :  { %v1153_v5 = vsub.f32 %v976_v41, %v1151_v3 }
 0x587   :  { %v1155_v6 = vrot.slane %v1153_v5, 7 }
 0x589   :  { %v1157_v8 = vmul.f32 %v2198_v7, %v1155_v6  ;;  %v1708_v7 = vld [vmem:[%s2679_s6] sm:$0xff] }
 0x58b   :  { %v1158_v10 = vadd.f32 %v2196_v2, %v1157_v8  ;;  %v1709_v8 = vld [vmem:[%s2679_s6 + $0x8] sm:$0xff] }
 0x58d   :  { %1159 = vst [vmem:[#allocation2] sm:$0x10] %v1158_v10  ;;  %v1161_v11 = vrot.slane %v1158_v10, 4 }
 0x58f   :  { %1846 = vmatmul.mubr.msk.f32.vlgmr.msra.gmra.mrb[10].mxu0 %vm266_vm1, %v1161_v11  ;;  %1979 = vmatmul.mubr.msk.f32.vlgmr.msra.gmra.mrb[14].mxu1 %vm266_vm1, %v1161_v11  ;;  %v1710_v11 = vld [vmem:[%s2679_s6 + $0x10] sm:$0xff] }
 0x590   :  { %2108 = vmatpush1.bf16.msra.mxu0 %v2469_v9  ;;  %2115 = vmatpush3.bf16.msra.mxu1 %v2488_v27 }
 0x591   :  { %2110 = vmatprep.subr.bf16.mxu0 %v2473_v16  ;;  %2116 = vmatprep.subr.bf16.mxu1 %v2358_v22 }
 0x592   :  { %1410 = vmatprep.mubr.f32.mxu0 %v2357_v0  ;;  %1989 = vmatprep.mubr.msk.f32.mxu1 %vm2359_vm2, %v2357_v0 }
 0x594   :  { %2112 = vmatpush1.bf16.msra.mxu0 %v2475_v20  ;;  %2118 = vmatpush3.bf16.msra.mxu1 %v2497_v30 }
 0x595   :  { %2120 = vmatprep.subr.bf16.mxu0 %v2467_v4  ;;  %2127 = vmatprep.subr.bf16.mxu1 %v2358_v22 }
 0x662   :  { %v1230_v12 = vpop.f32.mrb[10].mxu0  ;;  %v1301_v13 = vpop.f32.mrb[14].mxu1 }
 0x663   :  { %v1306_v14 = vrot.slane %v1230_v12, 3  ;;  %v1232_v15 = vpop.f32.mrb[11].mxu0  ;;  %v1980_v17 = vpop.f32.mrb[15].mxu1  ;;  %v1325_v4 = vadd.f32 %v1301_v13, %v2525_v55  ;;  %v1711_v12 = vld [vmem:[%s2679_s6 + $0x18] sm:$0xff] }
 0x664   :  { %v1316_v21 = vrot.slane %v1232_v15, 3  ;;  %v2137_v13 = vpack.c.bf16 %v1711_v12, %v1710_v11 }
 0x665   :  { %v1308_v18 = vadd.f32 %v1306_v14, %v2516_v38  ;;  %v1327_v28 = vrot.slane %v1325_v4, 3 }
 0x666   :  { %v1318_v23 = vadd.f32 %v1316_v21, %v2519_v47 }
 0x667   :  { %v1848_v19 = vmul.f32 -1.442695, %v1308_v18 }
 0x668   :  { %v1849_v26 = vmul.f32 -1.442695, %v1318_v23 }
 0x669   :  { %2199 = vpow2.f32 %v1848_v19 }
 0x673   :  { %v2200_v24 = vpop.eup %2199 }
 0x674   :  { %v1312_v25 = vadd.f32 1.0, %v2200_v24 }
 0x676   :  { %2201 = vrcp.f32 %v1312_v25 }
 0x677   :  { %2203 = vpow2.f32 %v1849_v26 }
 0x680   :  { %v2202_v29 = vpop.eup %2201 }
 0x681   :  { %v1329_v31 = vmul.f32 %v2202_v29, %v1327_v28  ;;  %v2204_v33 = vpop.eup %2203 }
 0x682   :  { %v1322_v34 = vadd.f32 1.0, %v2204_v33 }
 0x683   :  { %v1330_v32 = vadd.f32 %v1329_v31, %v2528_v60 }
 0x685   :  { %2205 = vtanh.f32 %v1330_v32 }
 0x686   :  { %2207 = vrcp.f32 %v1322_v34 }
 0x68f   :  { %v2206_v35 = vpop.eup %2205 }
 0x690   :  { %v1333_v36 = vrot.slane %v2206_v35, 1  ;;  %v2208_v40 = vpop.eup %2207 }
 0x692   :  { %v1335_v37 = vsub.f32 %v1158_v10, %v1333_v36  ;;  %v2134_v10 = vpack.c.bf16 %v1709_v8, %v1708_v7 }
 0x694   :  { %v1337_v39 = vrot.slane %v1335_v37, 7 }
 0x696   :  { %v1339_v41 = vmul.f32 %v2208_v40, %v1337_v39 }
 0x698   :  { %v1340_v42 = vadd.f32 %v2206_v35, %v1339_v41 }
 0x69a   :  { %1341 = vst [vmem:[#allocation2] sm:$0x20] %v1340_v42  ;;  %v1343_v43 = vrot.slane %v1340_v42, 5 }
 0x69c   :  { %1850 = vmatmul.mubr.msk.f32.vlgmr.msra.gmra.mrb[12].mxu0 %vm266_vm1, %v1343_v43  ;;  %1990 = vmatmul.mubr.msk.f32.vlgmr.msra.gmra.mrb[16].mxu1 %vm266_vm1, %v1343_v43 }
 0x69d   :  { %2122 = vmatpush1.bf16.msra.mxu0 %v2469_v9  ;;  %2129 = vmatpush3.bf16.msra.mxu1 %v2488_v27 }
 0x69e   :  { %2124 = vmatprep.subr.bf16.mxu0 %v2473_v16  ;;  %2130 = vmatprep.subr.bf16.mxu1 %v2358_v22 }
 0x69f   :  { %1592 = vmatprep.mubr.f32.mxu0 %v2357_v0  ;;  %2000 = vmatprep.mubr.msk.f32.mxu1 %vm2359_vm2, %v2357_v0 }
 0x6a1   :  { %2126 = vmatpush1.bf16.msra.mxu0 %v2475_v20  ;;  %2132 = vmatpush3.bf16.msra.mxu1 %v2497_v30 }
 0x6a2   :  { %2133 = vmatprep.subr.bf16.mxu0 %v2358_v22 }
 0x76f   :  { %v1412_v44 = vpop.f32.mrb[12].mxu0  ;;  %v1483_v45 = vpop.f32.mrb[16].mxu1 }
 0x770   :  { %v1488_v9 = vrot.slane %v1412_v44, 2  ;;  %v1414_v46 = vpop.f32.mrb[13].mxu0  ;;  %v1991_v27 = vpop.f32.mrb[17].mxu1  ;;  %v1507_v30 = vadd.f32 %v1483_v45, %v2525_v55 }
 0x771   :  { %v1498_v49 = vrot.slane %v1414_v46, 2 }
 0x772   :  { %v1490_v16 = vadd.f32 %v1488_v9, %v2516_v38  ;;  %v1509_v53 = vrot.slane %v1507_v30, 2 }
 0x773   :  { %v1500_v50 = vadd.f32 %v1498_v49, %v2519_v47 }
 0x774   :  { %v1852_v48 = vmul.f32 -1.442695, %v1490_v16 }
 0x775   :  { %v1853_v20 = vmul.f32 -1.442695, %v1500_v50 }
 0x776   :  { %2209 = vpow2.f32 %v1852_v48 }
 0x780   :  { %v2210_v51 = vpop.eup %2209 }
 0x781   :  { %v1494_v52 = vadd.f32 1.0, %v2210_v51 }
 0x783   :  { %2211 = vrcp.f32 %v1494_v52 }
 0x784   :  { %2213 = vpow2.f32 %v1853_v20 }
 0x78d   :  { %v2212_v54 = vpop.eup %2211 }
 0x78e   :  { %v1511_v56 = vmul.f32 %v2212_v54, %v1509_v53  ;;  %v2214_v58 = vpop.eup %2213 }
 0x78f   :  { %v1504_v59 = vadd.f32 1.0, %v2214_v58 }
 0x790   :  { %v1512_v57 = vadd.f32 %v1511_v56, %v2528_v60 }
 0x792   :  { %2215 = vtanh.f32 %v1512_v57 }
 0x793   :  { %2217 = vrcp.f32 %v1504_v59 }
 0x79c   :  { %v2216_v61 = vpop.eup %2215 }
 0x79d   :  { %v1515_v62 = vrot.slane %v2216_v61, 1  ;;  %v2218_v2 = vpop.eup %2217 }
 0x79f   :  { %v1517_v63 = vsub.f32 %v1340_v42, %v1515_v62 }
 0x7a1   :  { %v1519_v1 = vrot.slane %v1517_v63, 7 }
 0x7a3   :  { %v1521_v3 = vmul.f32 %v2218_v2, %v1519_v1 }
 0x7a5   :  { %v1522_v5 = vadd.f32 %v2216_v61, %v1521_v3 }
 0x7a7   :  { %1523 = vst [vmem:[#allocation2] sm:$0x40] %v1522_v5  ;;  %v1525_v6 = vrot.slane %v1522_v5, 6 }
 0x7a9   :  { %1854 = vmatmul.mubr.msk.f32.vlgmr.msra.gmra.mrb[14].mxu0 %vm266_vm1, %v1525_v6  ;;  %2001 = vmatmul.mubr.msk.f32.vlgmr.msra.gmra.mrb[18].mxu1 %vm266_vm1, %v1525_v6 }
 0x7aa   :  { %2011 = vmatprep.mubr.msk.f32.mxu0 %vm2359_vm2, %v2357_v0  ;;  %2135 = vmatpush3.bf16.msra.mxu0 %v2134_v10 }
 0x7ab   :  { %2136 = vmatprep.subr.bf16.mxu0 %v2358_v22 }
 0x7ae   :  { %2138 = vmatpush3.bf16.msra.mxu0 %v2137_v13 }
 0x87c   :  { %v1594_v0 = vpop.f32.mrb[14].mxu0  ;;  %v1665_v14 = vpop.f32.mrb[18].mxu1 }
 0x87d   :  { %v1670_v15 = vrot.slane %v1594_v0, 1  ;;  %v1596_v17 = vpop.f32.mrb[15].mxu0  ;;  %v2002_v18 = vpop.f32.mrb[19].mxu1  ;;  %v1689_v22 = vadd.f32 %v1665_v14, %v2525_v55 }
 0x87e   :  { %v1680_v23 = vrot.slane %v1596_v17, 1 }
 0x87f   :  { %v1672_v19 = vadd.f32 %v1670_v15, %v2516_v38  ;;  %v1691_v28 = vrot.slane %v1689_v22, 1 }
 0x880   :  { %v1682_v24 = vadd.f32 %v1680_v23, %v2519_v47 }
 0x881   :  { %v1856_v21 = vmul.f32 -1.442695, %v1672_v19 }
 0x882   :  { %v1857_v4 = vmul.f32 -1.442695, %v1682_v24 }
 0x883   :  { %2219 = vpow2.f32 %v1856_v21 }
 0x88d   :  { %v2220_v25 = vpop.eup %2219 }
 0x88e   :  { %v1676_v26 = vadd.f32 1.0, %v2220_v25 }
 0x890   :  { %2221 = vrcp.f32 %v1676_v26 }
 0x891   :  { %2223 = vpow2.f32 %v1857_v4 }
 0x89a   :  { %v2222_v29 = vpop.eup %2221 }
 0x89b   :  { %v1693_v31 = vmul.f32 %v2222_v29, %v1691_v28  ;;  %v2224_v33 = vpop.eup %2223 }
 0x89c   :  { %v1686_v38 = vadd.f32 1.0, %v2224_v33 }
 0x89d   :  { %v1694_v32 = vadd.f32 %v1693_v31, %v2528_v60  ;;  %v1858_v60 = vld [vmem:[%s2680_s7] ss:$0 sm:$0xff] }
 0x89f   :  { %2225 = vtanh.f32 %v1694_v32 }
 0x8a0   :  { %2227 = vrcp.f32 %v1686_v38 }
 0x8a9   :  { %v2226_v34 = vpop.eup %2225 }
 0x8aa   :  { %v1697_v35 = vrot.slane %v2226_v34, 1  ;;  %v2228_v37 = vpop.eup %2227 }
 0x8ac   :  { %v1699_v36 = vsub.f32 %v1522_v5, %v1697_v35 }
 0x8ae   :  { %v1701_v47 = vrot.slane %v1699_v36, 7 }
 0x8b0   :  { %v1703_v39 = vmul.f32 %v2228_v37, %v1701_v47 }
 0x8b2   :  { %v1704_v40 = vadd.f32 %v2226_v34, %v1703_v39 }
 0x8b4   :  { %1705 = vst [vmem:[#allocation2] sm:$0x80] %v1704_v40  ;;  %1706 = vst [vmem:[%s2682_s9 - $0x7] sm:$0x80] %v1704_v40  ;;  %s2360_s9 = smov [#allocation11]  }
 0x8b5   :  { %s1809_s28 = sshll.u32 %s2360_s9, 4  ;;  %s1810_s28 = int_to_ptr.vmem [resolvable:$true] %s1809_s28 }
 0x8b6   :  { %s2321_s7 = scalar_lea.vmem %s1810_s28, 128  ;;  %p2326_p5 = scmp.lt.s32.totalorder %s1810_s28, %s1810_s28 }
 0x8b7   :  { %p2322_p4 = scmp.ne.s32.totalorder %s1810_s28, %s2321_s7  ;;  %p2327_p6 = scmp.lt.s32.totalorder %s2321_s7, %s2321_s7 }
 0x8b9   :  { %p2328_p7 = por %p2327_p6, %p2326_p5 }
 0x8bb   :  { %v1707_v55 = vld [vmem:[#allocation2] sm:$0xff]  ;;  %p2329_p8 = pnand %p2328_p7, %p2322_p4 }
 0x8bc   :  { %2012 = vmatmul.mubr.msk.f32.vlgmr.msra.gmra.mrb[16].mxu0 %vm266_vm1, %v1707_v55 }
 0x98f   :  { %v1788_v41 = vpop.f32.mrb[16].mxu0 }
 0x990   :  { %v1789_v42 = vadd.f32 %v1858_v60, %v1788_v41  ;;  %v2013_v43 = vpop.f32.mrb[17].mxu0 }
 0x992   :  { %1792 = vmax.xlane.f32.xlu0 %v1789_v42 }
 0xa1f   :  { %v1793_v44 = vpop.xlane.xlu0 %1792 }
 0xa20   :  { %v1794_v45 = vsub.f32 %v1789_v42, %v1793_v44 }
 0xa22   :  { %v1795_v9 = vmul.f32 1.442695, %v1794_v45 }
 0xa24   :  { %2229 = vpow2.f32 %v1795_v9 }
 0xa2e   :  { %v2230_v46 = vpop.eup %2229 }
 0xa2f   :  { %1797 = vadd.xlane.f32.xlu0 %v2230_v46 }
 0xabc   :  { %v1798_v27 = vpop.xlane.xlu0 %1797 }
 0xabd   :  { %2231 = vlog2.f32 %v1798_v27 }
 0xac7   :  { %v2232_v16 = vpop.eup %2231 }
 0xac8   :  { %v1800_v48 = vmul.f32 0.6931472, %v2232_v16 }
 0xaca   :  { %v1801_v49 = vsub.f32 %v1794_v45, %v1800_v48 }
 0xacc   :  { %1802 = vst [vmem:[#allocation11] sm:$0xff] %v1801_v49 }
 0xacd   :  { %2332 = shalt.err (!%p2329_p8)
}
 0xace   :  { %s2333_s11 = scalar_lea.hbm %s2681_s8, 128 }
 0xacf   :  { %p2334_p9 = scmp.ne.s32.totalorder %s2681_s8, %s2333_s11  ;;  %p2337_p10 = scmp.lt.u32.totalorder %s2333_s11, %s2681_s8 }
 0xad1   :  { %p2339_p11 = pnand %p2337_p10, %p2334_p9 }
 0xad3   :  { %2342 = shalt.err (!%p2339_p11)
}
 0xad4   :  { %1812 = dma.vmem_to_hbm [thread:$0]  %s1810_s28, 128, %s2681_s8, [#allocation5]  }
 0xad5   :  { %2349 = dma.done.wait [#allocation5], 128  }
 0xad6   :  { %2350 = vsyncadd [#allocation5], 4294967168 }
 0xad7   :  { %1820 = vsyncpa [#allocation4], 1 }
 0xad8   :  { %1821 = vsyncpa [#allocation7], 1 }
 0xad9   :  { %1822 = vsyncpa [#allocation10], 1 }
 0xada   :  { %1823 = vsyncpa [#allocation5], 1 }

</bundles_post_ra>
